<compile_context>
chip_gen: v7x
topology: tpu7x:2x2x1
jax: 0.10.0
libtpu: 0.0.40
codegen_flags: <defaults>
</compile_context>

<pallas_src>
import jax
import jax.numpy as jnp
from jax.experimental import pallas as pl
from jax.experimental.pallas import tpu as pltpu

HIDDEN = 64


def _mlp_kernel(x_ref, w1_ref, b1_ref, w2_ref, b2_ref, w3_ref, b3_ref, o_ref):
    # All-f32 MLP: f32 operands into the MXU with f32 accumulation, f32 epilogue
    # (v5e's VPU/EUP have no bf16 path; memory-bound so f32 MXU passes are free).
    x = x_ref[...]
    h1 = jnp.maximum(
        jnp.dot(x, w1_ref[...], preferred_element_type=jnp.float32) + b1_ref[...],
        0.0)
    h2 = jnp.maximum(
        jnp.dot(h1, w2_ref[...], preferred_element_type=jnp.float32) + b2_ref[...],
        0.0)
    logits = (jnp.dot(h2, w3_ref[...], preferred_element_type=jnp.float32)
              + b3_ref[...])
    # out lane width (out_size) < 128 -> masked stores; second-order here.
    o_ref[...] = jax.nn.sigmoid(logits)


def _round_up(v, m):
    return ((v + m - 1) // m) * m


def _choose_tb(batch, in_size, out_size, vmem_tile_budget=16 * 1024 * 1024):
    """Pick the batch-tile row count from a VMEM byte budget (all f32)."""
    per_row_bytes = 4 * (
        2 * in_size          # double-buffered x tile
        + 2 * out_size       # double-buffered out tile
        + 2 * HIDDEN         # live h1 / h2 intermediates
        + in_size + out_size  # slack for in-body copies / epilogue temps
    )
    tb = max(8, (vmem_tile_budget // per_row_bytes) // 8 * 8)
    tb = min(tb, 32768)
    # Keep >= 4 grid steps when the batch allows: shards the batch axis across
    # v7x's two TensorCores and keeps the DMA pipeline fed (no-op on v5e/v6e).
    tb = min(tb, max(8, _round_up(pl.cdiv(batch, 4), 8)))
    return tb


@jax.jit
def action_predictor_forward(x, params):
    """x: [B, input_size] float32; params: dict of f32 weights/biases."""
    B, in_size = x.shape
    out_size = params["w3"].shape[1]

    TB = _choose_tb(B, in_size, out_size)
    grid = (pl.cdiv(B, TB),)  # partial last block handled by Pallas masking

    resident = lambda arr: pl.BlockSpec(arr.shape, lambda i: (0, 0))

    weight_elems = in_size * HIDDEN + HIDDEN * HIDDEN + HIDDEN * out_size
    flops = 2 * B * weight_elems
    bytes_accessed = (B * (in_size + out_size) * 4            # x in, out
                      + (weight_elems + 2 * HIDDEN + out_size) * 4)

    out = pl.pallas_call(
        _mlp_kernel,
        out_shape=jax.ShapeDtypeStruct((B, out_size), jnp.float32),
        grid=grid,
        in_specs=[
            pl.BlockSpec((TB, in_size), lambda i: (i, 0)),
            resident(params["w1"]), resident(params["b1"]),
            resident(params["w2"]), resident(params["b2"]),
            resident(params["w3"]), resident(params["b3"]),
        ],
        out_specs=pl.BlockSpec((TB, out_size), lambda i: (i, 0)),
        compiler_params=pltpu.CompilerParams(
            dimension_semantics=("parallel",),
            vmem_limit_bytes=32 * 1024 * 1024,
        ),
        cost_estimate=pl.CostEstimate(
            flops=flops,
            transcendentals=B * out_size,
            bytes_accessed=bytes_accessed,
        ),
    )(x, params["w1"], params["b1"], params["w2"], params["b2"],
      params["w3"], params["b3"])
    return out


def init_params(key, input_size, output_size):
    """Deterministic init mirroring nn.Linear's U(-1/sqrt(fan_in), 1/sqrt(fan_in))."""
    def linear(key, fan_in, fan_out):
        kw, kb = jax.random.split(key)
        bound = 1.0 / jnp.sqrt(jnp.float32(fan_in))
        w = jax.random.uniform(kw, (fan_in, fan_out), jnp.float32, -bound, bound)
        b = jax.random.uniform(kb, (1, fan_out), jnp.float32, -bound, bound)
        return w, b

    k1, k2, k3 = jax.random.split(key, 3)
    w1, b1 = linear(k1, input_size, HIDDEN)
    w2, b2 = linear(k2, HIDDEN, HIDDEN)
    w3, b3 = linear(k3, HIDDEN, output_size)
    return {"w1": w1, "b1": b1, "w2": w2, "b2": b2, "w3": w3, "b3": b3}


def _reference_forward(x, p):
    """Pure-JAX float32 reference (same math as the PyTorch module)."""
    h1 = jnp.maximum(
        jnp.dot(x, p["w1"], preferred_element_type=jnp.float32) + p["b1"], 0.0)
    h2 = jnp.maximum(
        jnp.dot(h1, p["w2"], preferred_element_type=jnp.float32) + p["b2"], 0.0)
    logits = jnp.dot(h2, p["w3"], preferred_element_type=jnp.float32) + p["b3"]
    return jax.nn.sigmoid(logits)


if __name__ == "__main__":
    key = jax.random.PRNGKey(0)
    kx, kp = jax.random.split(key)

    batch = 8
    input_size = 32
    output_size = 16

    x = jax.random.normal(kx, (batch, input_size), jnp.float32)
    params = init_params(kp, input_size, output_size)

    out = action_predictor_forward(x, params)
    out = jax.block_until_ready(out)

    ref = _reference_forward(x, params)
    assert out.shape == (batch, output_size)
    assert jnp.allclose(out, ref, atol=2e-3, rtol=2e-3), (
        float(jnp.max(jnp.abs(out - ref))))

    print("KERNEL_OK")
</pallas_src>

<mosaic_0001>
module attributes {stable_mosaic.version = 11 : i64} {
  func.func @_mlp_kernel(%arg0: i32, %arg1: memref<8x32xf32, #tpu.memory_space<vmem>>, %arg2: memref<32x64xf32, #tpu.memory_space<vmem>>, %arg3: memref<1x64xf32, #tpu.memory_space<vmem>>, %arg4: memref<64x64xf32, #tpu.memory_space<vmem>>, %arg5: memref<1x64xf32, #tpu.memory_space<vmem>>, %arg6: memref<64x16xf32, #tpu.memory_space<vmem>>, %arg7: memref<1x16xf32, #tpu.memory_space<vmem>>, %arg8: memref<8x16xf32, #tpu.memory_space<vmem>>) attributes {dimension_semantics = [#tpu.dimension_semantics<parallel>], iteration_bounds = array<i64: 1>, scalar_prefetch = 0 : i64, scratch_operands = 0 : i64, tpu.core_type = #tpu.core_type<tc>, window_params = [{transform_indices = @transform_0, window_bounds = array<i64: 8, 32>}, {pipeline_mode = #tpu.pipeline_mode<synchronous>, transform_indices = @transform_1, window_bounds = array<i64: 32, 64>}, {pipeline_mode = #tpu.pipeline_mode<synchronous>, transform_indices = @transform_2, window_bounds = array<i64: 1, 64>}, {pipeline_mode = #tpu.pipeline_mode<synchronous>, transform_indices = @transform_3, window_bounds = array<i64: 64, 64>}, {pipeline_mode = #tpu.pipeline_mode<synchronous>, transform_indices = @transform_4, window_bounds = array<i64: 1, 64>}, {pipeline_mode = #tpu.pipeline_mode<synchronous>, transform_indices = @transform_5, window_bounds = array<i64: 64, 16>}, {pipeline_mode = #tpu.pipeline_mode<synchronous>, transform_indices = @transform_6, window_bounds = array<i64: 1, 16>}, {transform_indices = @transform_7, window_bounds = array<i64: 8, 16>}]} {
    %c0 = arith.constant 0 : index
    %c0_0 = arith.constant 0 : index
    %0 = vector.load %arg1[%c0, %c0_0] : memref<8x32xf32, #tpu.memory_space<vmem>>, vector<8x32xf32>
    %c0_1 = arith.constant 0 : index
    %c0_2 = arith.constant 0 : index
    %1 = vector.load %arg2[%c0_1, %c0_2] : memref<32x64xf32, #tpu.memory_space<vmem>>, vector<32x64xf32>
    %cst = arith.constant dense<0.000000e+00> : vector<8x64xf32>
    %2 = tpu.matmul %0, %1, %cst {dimension_numbers = #tpu.dot_dimension_numbers<[1], [0], [0], [1], [0, 0, 1, 1], [], []>} : vector<8x32xf32>, vector<32x64xf32>, vector<8x64xf32> -> vector<8x64xf32>
    %c0_3 = arith.constant 0 : index
    %c0_4 = arith.constant 0 : index
    %3 = vector.load %arg3[%c0_3, %c0_4] : memref<1x64xf32, #tpu.memory_space<vmem>>, vector<1x64xf32>
    %4 = vector.broadcast %3 : vector<1x64xf32> to vector<8x64xf32>
    %5 = arith.addf %2, %4 : vector<8x64xf32>
    %cst_5 = arith.constant 0.000000e+00 : f32
    %6 = vector.broadcast %cst_5 : f32 to vector<8x64xf32>
    %7 = arith.maximumf %5, %6 : vector<8x64xf32>
    %c0_6 = arith.constant 0 : index
    %c0_7 = arith.constant 0 : index
    %8 = vector.load %arg4[%c0_6, %c0_7] : memref<64x64xf32, #tpu.memory_space<vmem>>, vector<64x64xf32>
    %cst_8 = arith.constant dense<0.000000e+00> : vector<8x64xf32>
    %9 = tpu.matmul %7, %8, %cst_8 {dimension_numbers = #tpu.dot_dimension_numbers<[1], [0], [0], [1], [0, 0, 1, 1], [], []>} : vector<8x64xf32>, vector<64x64xf32>, vector<8x64xf32> -> vector<8x64xf32>
    %c0_9 = arith.constant 0 : index
    %c0_10 = arith.constant 0 : index
    %10 = vector.load %arg5[%c0_9, %c0_10] : memref<1x64xf32, #tpu.memory_space<vmem>>, vector<1x64xf32>
    %11 = vector.broadcast %10 : vector<1x64xf32> to vector<8x64xf32>
    %12 = arith.addf %9, %11 : vector<8x64xf32>
    %cst_11 = arith.constant 0.000000e+00 : f32
    %13 = vector.broadcast %cst_11 : f32 to vector<8x64xf32>
    %14 = arith.maximumf %12, %13 : vector<8x64xf32>
    %c0_12 = arith.constant 0 : index
    %c0_13 = arith.constant 0 : index
    %15 = vector.load %arg6[%c0_12, %c0_13] : memref<64x16xf32, #tpu.memory_space<vmem>>, vector<64x16xf32>
    %cst_14 = arith.constant dense<0.000000e+00> : vector<8x16xf32>
    %16 = tpu.matmul %14, %15, %cst_14 {dimension_numbers = #tpu.dot_dimension_numbers<[1], [0], [0], [1], [0, 0, 1, 1], [], []>} : vector<8x64xf32>, vector<64x16xf32>, vector<8x16xf32> -> vector<8x16xf32>
    %c0_15 = arith.constant 0 : index
    %c0_16 = arith.constant 0 : index
    %17 = vector.load %arg7[%c0_15, %c0_16] : memref<1x16xf32, #tpu.memory_space<vmem>>, vector<1x16xf32>
    %18 = vector.broadcast %17 : vector<1x16xf32> to vector<8x16xf32>
    %19 = arith.addf %16, %18 : vector<8x16xf32>
    %20 = arith.negf %19 : vector<8x16xf32>
    %21 = math.exp %20 : vector<8x16xf32>
    %cst_17 = arith.constant 1.000000e+00 : f32
    %22 = vector.broadcast %cst_17 : f32 to vector<8x16xf32>
    %23 = arith.addf %22, %21 : vector<8x16xf32>
    %24 = arith.divf %22, %23 : vector<8x16xf32>
    %c0_18 = arith.constant 0 : index
    %c0_19 = arith.constant 0 : index
    %25 = vector.load %arg8[%c0_18, %c0_19] : memref<8x16xf32, #tpu.memory_space<vmem>>, vector<8x16xf32>
    tpu.vector_store %arg8[%c0_18, %c0_19], %24 {strides = array<i32>} : memref<8x16xf32, #tpu.memory_space<vmem>>, vector<8x16xf32>,
    return
  }
  func.func @transform_0(%arg0: i32) -> (i32, i32) {
    %c0_i32 = arith.constant 0 : i32
    %c0_i32_0 = arith.constant 0 : i32
    return %arg0, %c0_i32 : i32, i32
  }
  func.func @transform_1(%arg0: i32) -> (i32, i32) {
    %c0_i32 = arith.constant 0 : i32
    %c0_i32_0 = arith.constant 0 : i32
    %c0_i32_1 = arith.constant 0 : i32
    return %c0_i32, %c0_i32_0 : i32, i32
  }
  func.func @transform_2(%arg0: i32) -> (i32, i32) {
    %c0_i32 = arith.constant 0 : i32
    %c0_i32_0 = arith.constant 0 : i32
    %c0_i32_1 = arith.constant 0 : i32
    return %c0_i32, %c0_i32_0 : i32, i32
  }
  func.func @transform_3(%arg0: i32) -> (i32, i32) {
    %c0_i32 = arith.constant 0 : i32
    %c0_i32_0 = arith.constant 0 : i32
    %c0_i32_1 = arith.constant 0 : i32
    return %c0_i32, %c0_i32_0 : i32, i32
  }
  func.func @transform_4(%arg0: i32) -> (i32, i32) {
    %c0_i32 = arith.constant 0 : i32
    %c0_i32_0 = arith.constant 0 : i32
    %c0_i32_1 = arith.constant 0 : i32
    return %c0_i32, %c0_i32_0 : i32, i32
  }
  func.func @transform_5(%arg0: i32) -> (i32, i32) {
    %c0_i32 = arith.constant 0 : i32
    %c0_i32_0 = arith.constant 0 : i32
    %c0_i32_1 = arith.constant 0 : i32
    return %c0_i32, %c0_i32_0 : i32, i32
  }
  func.func @transform_6(%arg0: i32) -> (i32, i32) {
    %c0_i32 = arith.constant 0 : i32
    %c0_i32_0 = arith.constant 0 : i32
    %c0_i32_1 = arith.constant 0 : i32
    return %c0_i32, %c0_i32_0 : i32, i32
  }
  func.func @transform_7(%arg0: i32) -> (i32, i32) {
    %c0_i32 = arith.constant 0 : i32
    %c0_i32_0 = arith.constant 0 : i32
    return %arg0, %c0_i32 : i32, i32
  }
}

</mosaic_0001>

<bundles_post_ra>
// kernel: action_predictor_forward.1
= control target key start
LH: loop header
LB: loop body
LE: loop exit
PB: predicated region body
PF: predicated region fallthrough
CT: control target
= control target key end

     0   :  { %12 = vsyncpa [#allocation3], 0  ;;  %s682_s0 = inlined_call_operand.hbm [shape: f32[8,32], index: 0, kind: input, shape index: {}]   ;;  %s683_s1 = inlined_call_operand.vmem [shape: f32[32,64], index: 1, kind: input, shape index: {}]   ;;  %s684_s2 = inlined_call_operand.vmem [shape: f32[1,64], index: 2, kind: input, shape index: {}]   ;;  %s685_s3 = inlined_call_operand.vmem [shape: f32[64,64], index: 3, kind: input, shape index: {}]   ;;  %s686_s4 = inlined_call_operand.vmem [shape: f32[1,64], index: 4, kind: input, shape index: {}]   ;;  %s687_s5 = inlined_call_operand.vmem [shape: f32[64,16], index: 5, kind: input, shape index: {}]   ;;  %s688_s6 = inlined_call_operand.hbm [shape: f32[1,16], index: 6, kind: input, shape index: {}]   ;;  %s689_s7 = inlined_call_operand.hbm [shape: f32[8,16], index: 7, kind: output, shape index: {}]  }
   0x1   :  { %13 = vsyncpa [#allocation6], 0 }
   0x2   :  { %14 = vsyncpa [#allocation4], 0  ;;  %s531_s24 = smov [#allocation2]   ;;  %s532_s26 = smov [#allocation5]  }
   0x3   :  { %s21_s25 = sshll.u32 %s531_s24, 4  ;;  %s41_s27 = sshll.u32 %s532_s26, 4  ;;  %s22_s25 = int_to_ptr.vmem [resolvable:$true] %s21_s25  ;;  %s42_s27 = int_to_ptr.vmem [resolvable:$true] %s41_s27 }
   0x4   :  { %s459_s30 = scalar_lea.hbm %s682_s0, 128 }
   0x5   :  { %p460_p0 = scmp.ne.s32.totalorder %s682_s0, %s459_s30  ;;  %p463_p1 = scmp.lt.u32.totalorder %s459_s30, %s682_s0 }
   0x7   :  { %p465_p2 = pnand %p463_p1, %p460_p0 }
   0x9   :  { %468 = shalt.err (!%p465_p2)
}
   0xa   :  { %s469_s12 = scalar_lea.vmem %s22_s25, 128  ;;  %p474_p4 = scmp.lt.s32.totalorder %s22_s25, %s22_s25 }
   0xb   :  { %p470_p3 = scmp.ne.s32.totalorder %s22_s25, %s469_s12  ;;  %p475_p5 = scmp.lt.s32.totalorder %s469_s12, %s469_s12 }
   0xd   :  { %p476_p6 = por %p475_p5, %p474_p4 }
   0xf   :  { %p477_p7 = pnand %p476_p6, %p470_p3 }
  0x11   :  { %480 = shalt.err (!%p477_p7)
}
  0x12   :  { %24 = dma.hbm_to_vmem [thread:$0]  %s682_s0, 128, %s22_s25, [#allocation3]  }
  0x13   :  { %s481_s17 = scalar_lea.hbm %s688_s6, 16 }
  0x14   :  { %p482_p8 = scmp.ne.s32.totalorder %s688_s6, %s481_s17  ;;  %p485_p9 = scmp.lt.u32.totalorder %s481_s17, %s688_s6 }
  0x16   :  { %p487_p10 = pnand %p485_p9, %p482_p8 }
  0x18   :  { %490 = shalt.err (!%p487_p10)
}
  0x19   :  { %s491_s22 = scalar_lea.vmem %s42_s27, 16  ;;  %s495_s23 = scalar_lea.vmem %s42_s27, 32 }
  0x1a   :  { %p492_p11 = scmp.ne.s32.totalorder %s42_s27, %s491_s22  ;;  %p496_p12 = scmp.lt.s32.totalorder %s42_s27, %s42_s27 }
  0x1b   :  { %p497_p13 = scmp.lt.s32.totalorder %s495_s23, %s491_s22 }
  0x1d   :  { %p498_p0 = por %p497_p13, %p496_p12 }
  0x1f   :  { %p499_p1 = pnand %p498_p0, %p492_p11 }
  0x21   :  { %502 = shalt.err (!%p499_p1)
}
  0x22   :  { %44 = dma.hbm_to_vmem [thread:$0]  %s688_s6, 16, %s42_s27, [#allocation6]  }
  0x23   :  { %525 = dma.done.wait [#allocation3], 128  }
  0x24   :  { %526 = vsyncadd [#allocation3], 4294967168 }
  0x25   :  { %527 = dma.done.wait [#allocation6], 16  }
  0x26   :  { %528 = vsyncadd [#allocation6], 4294967280  ;;  %v533_v0 = vmov 0.0|0.0   ;;  %vm534_vm0 = vmmov 0   ;;  %v535_v1 = vmov 0.0   ;;  %v52_v2 = vld [vmem:[%s683_s1] sm:$0xff] }
  0x27   :  { %419 = vmatprep.subr.bf16.mxu0 %v533_v0  ;;  %378 = vmatprep.mubr.msk.f32.mxu0 %vm534_vm0, %v535_v1  ;;  %v53_v3 = vld [vmem:[%s683_s1 + $0x8] sm:$0xff]  ;;  %v54_v4 = vld [vmem:[%s683_s1 + $0x10] sm:$0xff]  ;;  %v55_v6 = vld [vmem:[%s683_s1 + $0x18] sm:$0xff]  ;;  %vm63_vm1 = vcmask 261120   ;;  %vm153_vm2 = vcmask 523264   ;;  %vm322_vm3 = vcmask 130048  }
  0x28   :  { %425 = vmatprep.subr.bf16.mxu1 %v533_v0  ;;  %397 = vmatprep.mubr.msk.f32.mxu1 %vm534_vm0, %v535_v1  ;;  %v420_v5 = vpack.c.bf16 %v53_v3, %v52_v2  ;;  %v138_v7 = vld [vmem:[%s685_s3] sm:$0xff]  ;;  %v139_v8 = vld [vmem:[%s685_s3 + $0x8] sm:$0xff]  ;;  %v140_v9 = vld [vmem:[%s685_s3 + $0x10] sm:$0xff]  ;;  %v423_v11 = vpack.c.bf16 %v55_v6, %v54_v4 }
  0x29   :  { %v141_v10 = vld [vmem:[%s685_s3 + $0x18] sm:$0xff]  ;;  %v426_v12 = vpack.c.bf16 %v139_v8, %v138_v7  ;;  %v142_v14 = vld [vmem:[%s685_s3 + $0x20] sm:$0xff]  ;;  %v143_v15 = vld [vmem:[%s685_s3 + $0x28] sm:$0xff] }
  0x2a   :  { %421 = vmatpush3.bf16.msra.mxu0 %v420_v5  ;;  %v429_v13 = vpack.c.bf16 %v141_v10, %v140_v9  ;;  %v51_v16 = vld [vmem:[#allocation2] sm:$0xff]  ;;  %v432_v17 = vpack.c.bf16 %v143_v15, %v142_v14  ;;  %v144_v18 = vld [vmem:[%s685_s3 + $0x30] sm:$0xff]  ;;  %v145_v19 = vld [vmem:[%s685_s3 + $0x38] sm:$0xff] }
  0x2b   :  { %422 = vmatprep.subr.bf16.mxu0 %v533_v0  ;;  %427 = vmatpush3.bf16.msra.mxu1 %v426_v12  ;;  %v435_v20 = vpack.c.bf16 %v145_v19, %v144_v18  ;;  %v228_v21 = vld [vmem:[%s687_s5] sm:$0xff]  ;;  %v229_v22 = vld [vmem:[%s687_s5 + $0x8] sm:$0xff]  ;;  %v230_v23 = vld [vmem:[%s687_s5 + $0x10] sm:$0xff] }
  0x2c   :  { %428 = vmatprep.subr.bf16.mxu1 %v533_v0  ;;  %v438_v24 = vpack.c.bf16 %v229_v22, %v228_v21  ;;  %v231_v25 = vld [vmem:[%s687_s5 + $0x18] sm:$0xff]  ;;  %v232_v27 = vld [vmem:[%s687_s5 + $0x20] sm:$0xff]  ;;  %v233_v28 = vld [vmem:[%s687_s5 + $0x28] sm:$0xff] }
  0x2d   :  { %v441_v26 = vpack.c.bf16 %v231_v25, %v230_v23  ;;  %v444_v29 = vpack.c.bf16 %v233_v28, %v232_v27  ;;  %v340_v30 = vld [vmem:[%s684_s2] ss:$0 sm:$0xff]  ;;  %v234_v35 = vld [vmem:[%s687_s5 + $0x30] sm:$0xff]  ;;  %v235_v36 = vld [vmem:[%s687_s5 + $0x38] sm:$0xff]  ;;  %s536_s2 = smov [#allocation7]  }
  0x2e   :  { %424 = vmatpush3.bf16.msra.mxu0 %v423_v11  ;;  %v447_v37 = vpack.c.bf16 %v235_v36, %v234_v35  ;;  %v342_v38 = vld [vmem:[%s686_s4] ss:$0 sm:$0xff]  ;;  %v344_v43 = vld [vmem:[#allocation5] ss:$0 sm:$0xff]  ;;  %s330_s5 = sshll.u32 %s536_s2, 4  ;;  %s331_s5 = int_to_ptr.vmem [resolvable:$true] %s330_s5 }
  0x2f   :  { %437 = vmatprep.subr.bf16.mxu0 %v533_v0  ;;  %430 = vmatpush3.bf16.msra.mxu1 %v429_v13  ;;  %s503_s4 = scalar_lea.vmem %s331_s5, 128  ;;  %p508_p3 = scmp.lt.s32.totalorder %s331_s5, %s331_s5 }
  0x30   :  { %431 = vmatprep.subr.bf16.mxu1 %v533_v0  ;;  %p504_p2 = scmp.ne.s32.totalorder %s331_s5, %s503_s4  ;;  %p509_p4 = scmp.lt.s32.totalorder %s503_s4, %s503_s4 }
  0x31   :  { %379 = vmatmul.mubr.msk.f32.vlgmr.msra.gmra.mrb[0].mxu0 %vm63_vm1, %v51_v16 }
  0x32   :  { %416 = vmatprep.mubr.msk.f32.mxu0 %vm534_vm0, %v535_v1  ;;  %439 = vmatpush3.bf16.msra.mxu0 %v438_v24  ;;  %p510_p5 = por %p509_p4, %p508_p3 }
  0x33   :  { %433 = vmatpush3.bf16.msra.mxu1 %v432_v17  ;;  %440 = vmatprep.subr.bf16.mxu0 %v533_v0 }
  0x34   :  { %434 = vmatprep.subr.bf16.mxu1 %v533_v0  ;;  %p511_p6 = pnand %p510_p5, %p504_p2 }
  0x36   :  { %442 = vmatpush3.bf16.msra.mxu0 %v441_v26 }
  0x37   :  { %436 = vmatpush3.bf16.msra.mxu1 %v435_v20  ;;  %443 = vmatprep.subr.bf16.mxu0 %v533_v0 }
  0x3a   :  { %445 = vmatpush3.bf16.msra.mxu0 %v444_v29 }
  0x3b   :  { %446 = vmatprep.subr.bf16.mxu0 %v533_v0 }
  0x3e   :  { %448 = vmatpush3.bf16.msra.mxu0 %v447_v37 }
 0x104   :  { %v133_v31 = vpop.f32.mrb[0].mxu0 }
 0x105   :  { %v134_v32 = vadd.f32 %v340_v30, %v133_v31  ;;  %v380_v33 = vpop.f32.mrb[1].mxu0 }
 0x107   :  { %v137_v34 = vmax.f32 %v134_v32, 0.0 }
 0x109   :  { %398 = vmatmul.mubr.msk.f32.vlgmr.msra.gmra.mrb[0].mxu1 %vm153_vm2, %v137_v34 }
 0x1dc   :  { %v223_v39 = vpop.f32.mrb[0].mxu1 }
 0x1dd   :  { %v224_v40 = vadd.f32 %v342_v38, %v223_v39  ;;  %v399_v41 = vpop.f32.mrb[1].mxu1 }
 0x1df   :  { %v227_v42 = vmax.f32 %v224_v40, 0.0 }
 0x1e1   :  { %417 = vmatmul.mubr.msk.f32.vlgmr.msra.gmra.mrb[2].mxu0 %vm153_vm2, %v227_v42 }
 0x2b4   :  { %v312_v44 = vpop.f32.mrb[2].mxu0 }
 0x2b5   :  { %v313_v45 = vadd.f32 %v344_v43, %v312_v44  ;;  %v418_v46 = vpop.f32.mrb[3].mxu0 }
 0x2b7   :  { %v346_v47 = vmul.f32 -1.442695, %v313_v45 }
 0x2b9   :  { %455 = vpow2.f32 %v346_v47 }
 0x2c3   :  { %v456_v48 = vpop.eup %455 }
 0x2c4   :  { %v319_v49 = vadd.f32 1.0, %v456_v48 }
 0x2c6   :  { %457 = vrcp.f32 %v319_v49 }
 0x2d0   :  { %v458_v50 = vpop.eup %457 }
 0x2d1   :  { %323 = vst.msk [vmem:[#allocation7] sm:$0xff] %vm322_vm3, %v458_v50 }
 0x2d2   :  { %514 = shalt.err (!%p511_p6)
}
 0x2d3   :  { %s515_s19 = scalar_lea.hbm %s689_s7, 128 }
 0x2d4   :  { %p516_p7 = scmp.ne.s32.totalorder %s689_s7, %s515_s19  ;;  %p519_p8 = scmp.lt.u32.totalorder %s515_s19, %s689_s7 }
 0x2d6   :  { %p521_p9 = pnand %p519_p8, %p516_p7 }
 0x2d8   :  { %524 = shalt.err (!%p521_p9)
}
 0x2d9   :  { %333 = dma.vmem_to_hbm [thread:$0]  %s331_s5, 128, %s689_s7, [#allocation4]  }
 0x2da   :  { %529 = dma.done.wait [#allocation4], 128  }
 0x2db   :  { %530 = vsyncadd [#allocation4], 4294967168 }
 0x2dc   :  { %337 = vsyncpa [#allocation3], 1 }
 0x2dd   :  { %338 = vsyncpa [#allocation6], 1 }
 0x2de   :  { %339 = vsyncpa [#allocation4], 1 }

</bundles_post_ra>
